<compile_context>
chip_gen: v7x
topology: tpu7x:2x2x1
jax: 0.10.0
libtpu: 0.0.40
codegen_flags: <defaults>
</compile_context>

<pallas_src>
import functools

import jax
import jax.numpy as jnp
from jax.experimental import pallas as pl
from jax.experimental.pallas import tpu as pltpu


def _simple_attention_kernel(x_ref, w_ref, b_ref, o_ref, *, use_mxu_pool):
    # x_ref: (Bt, T, D) VMEM   w_ref: (1, D) VMEM (same dtype as x)
    # b_ref: (1, 1) SMEM f32   o_ref: (Bt, D)
    x = x_ref[...]                                   # native dtype, no f32 copy
    w = w_ref[...][None, :, :]                       # (1, 1, D), lane-major
    b = b_ref[0, 0]                                  # scalar f32 from SMEM

    # proj(x).squeeze(-1): VPU multiply in the native dtype + f32-accumulated
    # lane reduce (avoids an N=1 MXU matmul).
    s = jnp.sum(x * w, axis=-1, keepdims=True, dtype=jnp.float32) + b  # (Bt,T,1)

    # Numerically stable softmax over the sequence axis T.
    # NOTE: s/e/m/l are lane-width 1; a lane-dense (Bt, T) layout for this phase
    # is only worth it for very large T when the softmax phase is exposed.
    m = jnp.max(s, axis=1, keepdims=True)            # (Bt, 1, 1)
    e = jnp.exp(s - m)                               # (Bt, T, 1) f32
    l = jnp.sum(e, axis=1, keepdims=True)            # (Bt, 1, 1) f32

    # (softmax * x).sum(dim=1) — pool first, normalize once at the end.
    if use_mxu_pool:
        # Sub-32-bit inputs: contract over T on the MXU (f32 accumulation).
        # Moves the per-element multiply-add off the VALU slot (v7x win).
        pooled = jnp.einsum(
            "btk,btd->bkd", e.astype(x.dtype), x,
            preferred_element_type=jnp.float32)[:, 0, :]          # (Bt, D) f32
    else:
        # f32 inputs: VPU multiply + sublane reduce keeps full f32 accuracy.
        pooled = jnp.sum(e * x.astype(jnp.float32), axis=1)       # (Bt, D) f32

    o_ref[...] = (pooled * pl.reciprocal(l[:, 0, :], approx=False)).astype(o_ref.dtype)


def _per_elem_bytes(itemsize, use_mxu_pool):
    """Approximate per-element VMEM footprint of one grid step:
    2*itemsize  double-buffered x tile
    + itemsize  score product tile (native dtype)
    + pooling intermediate: ~itemsize on the MXU path, f32 product on the VPU path.
    """
    return 3 * itemsize + (itemsize if use_mxu_pool else 4)


def _choose_bt(B, T, D, itemsize, use_mxu_pool, vmem_budget_bytes):
    """Pick the batch tile Bt:
      * VMEM-budgeted against the *real* per-step footprint (not just raw x),
      * a multiple of 8 (full-sublane, unmasked output stores) and a divisor of
        B (no ragged / masked blocks),
      * capped so grid_b >= 4 when B allows it (>= 2 steps per TensorCore under
        v7x megacore, so double-buffering has something to overlap),
      * tiny batches fall back to the full-dim block (exempt from (8,128) rule).
    """
    per_row = max(1, T * D * _per_elem_bytes(itemsize, use_mxu_pool))
    bt_mem = max(1, vmem_budget_bytes // per_row)

    if B >= 32 and bt_mem >= 8:
        bt = min(bt_mem, B // 4)          # >= 4 grid steps (2 per TC on v7x)
        bt = (bt // 8) * 8                # full-sublane output blocks
        while bt >= 8 and B % bt:         # keep blocks as exact divisors of B
            bt -= 8
        if bt >= 8:
            return bt

    # Small batch / tight VMEM: full-dim block if it fits, else the largest
    # divisor of B that does (may degrade to masked stores for odd B).
    bt = min(bt_mem, B)
    while B % bt:
        bt -= 1
    return bt


@functools.partial(jax.jit, static_argnames=("vmem_budget_bytes",))
def simple_attention(x, proj_w, proj_b, *, vmem_budget_bytes=12 * 1024 * 1024):
    """x: (B, T, D); proj_w: (1, D) (nn.Linear(dim,1).weight); proj_b: (1,).
    Returns (B, D) == (softmax(x @ proj_w.T + b, dim=T)[..., None] * x).sum(T)."""
    B, T, D = x.shape
    itemsize = x.dtype.itemsize
    use_mxu_pool = itemsize < 4           # bf16/f16: MXU pooling, no f32 x copy
    proj_w = proj_w.reshape(1, D).astype(x.dtype)
    proj_b = proj_b.reshape(1, 1).astype(jnp.float32)

    bt = _choose_bt(B, T, D, itemsize, use_mxu_pool, vmem_budget_bytes)
    grid_b = pl.cdiv(B, bt)               # bt divides B by construction

    # Derive the VMEM limit from the actual per-step footprint (+25% headroom)
    # rather than a hard-coded constant; caller keeps vmem_budget_bytes within
    # the generation's physical VMEM (64 MiB on v7x, 128 MiB on v5e/v6e).
    footprint = (bt * T * D * _per_elem_bytes(itemsize, use_mxu_pool)   # x + products
                 + 2 * bt * D * (4 + itemsize)                          # pooled + out dbuf
                 + 2 * D * (4 + itemsize)                               # weights
                 + 8 * bt * T * 4                                       # s/e/m/l slack
                 + 4096)
    vmem_limit = max(4 << 20, min(int(footprint * 1.25), 64 << 20))

    cost = pl.CostEstimate(
        flops=4 * B * T * D,                       # score mul/add + pooled mul/add
        transcendentals=B * T,                     # exp per (b, t)
        bytes_accessed=B * T * D * itemsize + D * itemsize + B * D * itemsize,
    )

    kernel = functools.partial(_simple_attention_kernel, use_mxu_pool=use_mxu_pool)
    return pl.pallas_call(
        kernel,
        out_shape=jax.ShapeDtypeStruct((B, D), x.dtype),
        grid_spec=pltpu.PrefetchScalarGridSpec(
            num_scalar_prefetch=0,
            grid=(grid_b,),
            in_specs=[
                # On v5e (most VMEM headroom, lowest HBM BW) a deeper pipeline
                # (pipeline_mode=pl.Buffered(3)) with a larger budget helps;
                # default double-buffering is kept for portability.
                pl.BlockSpec((bt, T, D), lambda i: (i, 0, 0)),
                pl.BlockSpec((1, D), lambda i: (0, 0)),
                pl.BlockSpec(memory_space=pltpu.MemorySpace.SMEM),
            ],
            out_specs=pl.BlockSpec((bt, D), lambda i: (i, 0)),
        ),
        compiler_params=pltpu.CompilerParams(
            dimension_semantics=("parallel",),
            vmem_limit_bytes=vmem_limit,
        ),
        cost_estimate=cost,
    )(x, proj_w, proj_b)
    # TODO(synk): for very long T (where T*D would force Bt < 8 or blow the
    # budget), add a second 'arbitrary' grid axis over T with online-softmax
    # (m, l, acc) scratch so VMEM is bounded independent of sequence length.


def reference(x, proj_w, proj_b):
    # pure-JAX mirror of the PyTorch forward
    logits = jnp.einsum("btd,d->bt", x, proj_w[0]) + proj_b[0]   # (B, T)
    w = jax.nn.softmax(logits, axis=1)                           # (B, T)
    return jnp.sum(w[..., None] * x, axis=1)                     # (B, D)


if __name__ == "__main__":
    B, T, D = 2, 8, 32
    key = jax.random.PRNGKey(0)
    kx, kw, kb = jax.random.split(key, 3)

    x = jax.random.normal(kx, (B, T, D), dtype=jnp.float32)
    # nn.Linear(dim, 1) params in native PyTorch layout: weight (1, dim), bias (1,)
    proj_w = jax.random.normal(kw, (1, D), dtype=jnp.float32) * 0.1
    proj_b = jax.random.normal(kb, (1,), dtype=jnp.float32) * 0.1

    # f32 path (VPU pooling)
    out = jax.block_until_ready(simple_attention(x, proj_w, proj_b))
    ref = reference(x, proj_w, proj_b)
    assert out.shape == (B, D)
    assert jnp.allclose(out, ref, atol=1e-5, rtol=1e-5), "f32 mismatch vs reference"

    # bf16 path (native-dtype score multiply + MXU pooling), looser tolerance
    xb = x.astype(jnp.bfloat16)
    wb = proj_w.astype(jnp.bfloat16)
    out_bf16 = jax.block_until_ready(simple_attention(xb, wb, proj_b))
    ref_bf16 = reference(xb.astype(jnp.float32), wb.astype(jnp.float32), proj_b)
    assert out_bf16.shape == (B, D)
    assert jnp.allclose(out_bf16.astype(jnp.float32), ref_bf16, atol=5e-2, rtol=5e-2), \
        "bf16 mismatch vs reference"

    print("KERNEL_OK")
</pallas_src>

<mosaic_0001>
module attributes {stable_mosaic.version = 11 : i64} {
  func.func @_simple_attention_kernel(%arg0: i32, %arg1: memref<2x8x32xf32, #tpu.memory_space<vmem>>, %arg2: memref<1x32xf32, #tpu.memory_space<vmem>>, %arg3: memref<1x1xf32, #tpu.memory_space<smem>>, %arg4: memref<2x32xf32, #tpu.memory_space<vmem>>) attributes {dimension_semantics = [#tpu.dimension_semantics<parallel>], iteration_bounds = array<i64: 1>, scalar_prefetch = 0 : i64, scratch_operands = 0 : i64, tpu.core_type = #tpu.core_type<tc>, window_params = [{transform_indices = @transform_0, window_bounds = array<i64: 2, 8, 32>}, {pipeline_mode = #tpu.pipeline_mode<synchronous>, transform_indices = @transform_1, window_bounds = array<i64: 1, 32>}, {transform_indices = @transform_2, window_bounds = array<i64: 1, 1>}, {transform_indices = @transform_3, window_bounds = array<i64: 2, 32>}]} {
    %c0 = arith.constant 0 : index
    %c0_0 = arith.constant 0 : index
    %c0_1 = arith.constant 0 : index
    %0 = vector.load %arg1[%c0, %c0_0, %c0_1] : memref<2x8x32xf32, #tpu.memory_space<vmem>>, vector<2x8x32xf32>
    %c0_2 = arith.constant 0 : index
    %c0_3 = arith.constant 0 : index
    %1 = vector.load %arg2[%c0_2, %c0_3] : memref<1x32xf32, #tpu.memory_space<vmem>>, vector<1x32xf32>
    %2 = vector.shape_cast %1 : vector<1x32xf32> to vector<1x1x32xf32>
    %c0_4 = arith.constant 0 : index
    %c0_5 = arith.constant 0 : index
    %3 = memref.load %arg3[%c0_4, %c0_5] : memref<1x1xf32, #tpu.memory_space<smem>>
    %4 = vector.broadcast %2 : vector<1x1x32xf32> to vector<2x8x32xf32>
    %5 = arith.mulf %0, %4 : vector<2x8x32xf32>
    %cst = arith.constant dense<0.000000e+00> : vector<2x8xf32>
    %6 = vector.multi_reduction <add>, %5, %cst [2] : vector<2x8x32xf32> to vector<2x8xf32>
    %7 = vector.shape_cast %6 : vector<2x8xf32> to vector<2x8x1xf32>
    %8 = vector.broadcast %3 : f32 to vector<2x8x1xf32>
    %9 = arith.addf %7, %8 : vector<2x8x1xf32>
    %cst_6 = arith.constant dense<0xFF800000> : vector<2x1xf32>
    %10 = vector.multi_reduction <maximumf>, %9, %cst_6 [1] : vector<2x8x1xf32> to vector<2x1xf32>
    %11 = vector.shape_cast %10 : vector<2x1xf32> to vector<2x1x1xf32>
    %12 = vector.broadcast %11 : vector<2x1x1xf32> to vector<2x8x1xf32>
    %13 = arith.subf %9, %12 : vector<2x8x1xf32>
    %14 = math.exp %13 : vector<2x8x1xf32>
    %cst_7 = arith.constant dense<0.000000e+00> : vector<2x1xf32>
    %15 = vector.multi_reduction <add>, %14, %cst_7 [1] : vector<2x8x1xf32> to vector<2x1xf32>
    %16 = vector.shape_cast %15 : vector<2x1xf32> to vector<2x1x1xf32>
    %17 = vector.broadcast %14 : vector<2x8x1xf32> to vector<2x8x32xf32>
    %18 = arith.mulf %17, %0 : vector<2x8x32xf32>
    %cst_8 = arith.constant dense<0.000000e+00> : vector<2x32xf32>
    %19 = vector.multi_reduction <add>, %18, %cst_8 [1] : vector<2x8x32xf32> to vector<2x32xf32>
    %20 = vector.shape_cast %16 : vector<2x1x1xf32> to vector<2x1xf32>
    %21 = tpu.reciprocal %20 : vector<2x1xf32> -> vector<2x1xf32>
    %22 = vector.broadcast %21 : vector<2x1xf32> to vector<2x32xf32>
    %23 = arith.mulf %19, %22 : vector<2x32xf32>
    %c0_9 = arith.constant 0 : index
    %c0_10 = arith.constant 0 : index
    %24 = vector.load %arg4[%c0_9, %c0_10] : memref<2x32xf32, #tpu.memory_space<vmem>>, vector<2x32xf32>
    tpu.vector_store %arg4[%c0_9, %c0_10], %23 {strides = array<i32>} : memref<2x32xf32, #tpu.memory_space<vmem>>, vector<2x32xf32>,
    return
  }
  func.func @transform_0(%arg0: i32) -> (i32, i32, i32) {
    %c0_i32 = arith.constant 0 : i32
    %c0_i32_0 = arith.constant 0 : i32
    %c0_i32_1 = arith.constant 0 : i32
    return %arg0, %c0_i32, %c0_i32_0 : i32, i32, i32
  }
  func.func @transform_1(%arg0: i32) -> (i32, i32) {
    %c0_i32 = arith.constant 0 : i32
    %c0_i32_0 = arith.constant 0 : i32
    %c0_i32_1 = arith.constant 0 : i32
    return %c0_i32, %c0_i32_0 : i32, i32
  }
  func.func @transform_2(%arg0: i32) -> (i32, i32) {
    %c0_i32 = arith.constant 0 : i32
    %c0_i32_0 = arith.constant 0 : i32
    %c0_i32_1 = arith.constant 0 : i32
    return %c0_i32, %c0_i32_0 : i32, i32
  }
  func.func @transform_3(%arg0: i32) -> (i32, i32) {
    %c0_i32 = arith.constant 0 : i32
    %c0_i32_0 = arith.constant 0 : i32
    return %arg0, %c0_i32 : i32, i32
  }
}

</mosaic_0001>

<bundles_post_ra>
// kernel: simple_attention.1
= control target key start
LH: loop header
LB: loop body
LE: loop exit
PB: predicated region body
PF: predicated region fallthrough
CT: control target
= control target key end

     0   :  { %9 = vsyncpa [#allocation4], 0  ;;  %s243_s0 = inlined_call_operand.hbm [shape: f32[2,8,32], index: 0, kind: input, shape index: {}]   ;;  %s244_s1 = inlined_call_operand.vmem [shape: f32[1,32], index: 1, kind: input, shape index: {}]   ;;  %s245_s2 = inlined_call_operand.<no memory space> [shape: f32[1,1], index: 2, kind: input, shape index: {}]   ;;  %s246_s3 = inlined_call_operand.hbm [shape: f32[2,32], index: 3, kind: output, shape index: {}]  }
   0x1   :  { %10 = vsyncpa [#allocation5], 0  ;;  %s185_s12 = smov [#allocation3]   ;;  %s137_s16 = scalar_lea.hbm %s243_s0, 256 }
   0x2   :  { %s16_s13 = sshll.u32 %s185_s12, 4  ;;  %p138_p0 = scmp.ne.s32.totalorder %s243_s0, %s137_s16  ;;  %s17_s13 = int_to_ptr.vmem [resolvable:$true] %s16_s13 }
   0x3   :  { %p141_p1 = scmp.lt.u32.totalorder %s137_s16, %s243_s0 }
   0x5   :  { %p143_p2 = pnand %p141_p1, %p138_p0 }
   0x7   :  { %146 = shalt.err (!%p143_p2)
}
   0x8   :  { %s147_s21 = scalar_lea.vmem %s17_s13, 256  ;;  %p152_p4 = scmp.lt.s32.totalorder %s17_s13, %s17_s13 }
   0x9   :  { %p148_p3 = scmp.ne.s32.totalorder %s17_s13, %s147_s21  ;;  %p153_p5 = scmp.lt.s32.totalorder %s147_s21, %s147_s21 }
   0xb   :  { %p154_p6 = por %p153_p5, %p152_p4 }
   0xd   :  { %p155_p7 = pnand %p154_p6, %p148_p3 }
   0xf   :  { %158 = shalt.err (!%p155_p7)
}
  0x10   :  { %s186_s22 = smov 128   ;;  %s187_s23 = smov 8  }
  0x11   :  { %22 = dma.hbm_to_vmem [thread:$0]  %s243_s0, 256, %s17_s13, [#allocation4], %s186_s22, %s186_s22, %s187_s23  }
  0x12   :  { %181 = dma.done.wait [#allocation4], 256  }
  0x13   :  { %182 = vsyncadd [#allocation4], 4294967040  ;;  %v30_v0 = vld [vmem:[#allocation3] sm:$0xff]  ;;  %vm42_vm0 = vcmask 261120   ;;  %v31_v2 = vld [vmem:[#allocation3 + $0x8] sm:$0xff]  ;;  %v49_v7 = vstv %s245_s2  ;;  %s188_s0 = smov [#allocation6]  }
  0x14   :  { %v124_v1 = vld [vmem:[%s244_s1] ss:$0 sm:$0xff]  ;;  %s115_s1 = sshll.u32 %s188_s0, 4  ;;  %vm104_vm1 = vcmask 1041409   ;;  %vm107_vm2 = vcmask 254976   ;;  %s116_s1 = int_to_ptr.vmem [resolvable:$true] %s115_s1 }
  0x15   :  { %v40_v3 = vmul.f32 %v124_v1, %v30_v0  ;;  %v41_v4 = vmul.f32 %v124_v1, %v31_v2  ;;  %s159_s2 = scalar_lea.vmem %s116_s1, 32  ;;  %p164_p9 = scmp.lt.s32.totalorder %s116_s1, %s116_s1 }
  0x16   :  { %p160_p8 = scmp.ne.s32.totalorder %s116_s1, %s159_s2  ;;  %p165_p10 = scmp.lt.s32.totalorder %s159_s2, %s159_s2 }
  0x17   :  { %v43_v5 = vsel %vm42_vm0, %v40_v3, 0.0  ;;  %v46_v6 = vsel %vm42_vm0, %v41_v4, 0.0 }
  0x18   :  { %44 = vadd.xlane.f32.xlu0 %v43_v5  ;;  %p166_p11 = por %p165_p10, %p164_p9 }
  0x1a   :  { %p167_p12 = pnand %p166_p11, %p160_p8 }
  0x1c   :  { %47 = vadd.xlane.f32.xlu0 %v46_v6 }
  0xa5   :  { %v45_v8 = vpop.xlane.xlu0 %44 }
  0xa6   :  { %v50_v9 = vadd.f32 %v49_v7, %v45_v8 }
  0xa8   :  { %v52_v10 = vrot.slane %v50_v9, 4 }
  0xa9   :  { %v48_v11 = vpop.xlane.xlu0 %47 }
  0xaa   :  { %v53_v12 = vmax.f32 %v50_v9, %v52_v10  ;;  %v51_v13 = vadd.f32 %v49_v7, %v48_v11 }
  0xac   :  { %v54_v14 = vrot.slane %v53_v12, 2  ;;  %v58_v15 = vrot.slane %v51_v13, 4 }
  0xae   :  { %v55_v16 = vmax.f32 %v53_v12, %v54_v14  ;;  %v59_v17 = vmax.f32 %v51_v13, %v58_v15 }
  0xb0   :  { %v56_v18 = vrot.slane %v55_v16, 1  ;;  %v60_v19 = vrot.slane %v59_v17, 2 }
  0xb2   :  { %v57_v20 = vmax.f32 %v55_v16, %v56_v18  ;;  %v61_v21 = vmax.f32 %v59_v17, %v60_v19 }
  0xb4   :  { %v64_v22 = vsub.f32 %v50_v9, %v57_v20  ;;  %v62_v23 = vrot.slane %v61_v21, 1 }
  0xb6   :  { %v66_v24 = vmul.f32 1.442695, %v64_v22  ;;  %v63_v25 = vmax.f32 %v61_v21, %v62_v23 }
  0xb8   :  { %129 = vpow2.f32 %v66_v24  ;;  %v65_v26 = vsub.f32 %v51_v13, %v63_v25 }
  0xba   :  { %v68_v27 = vmul.f32 1.442695, %v65_v26 }
  0xbc   :  { %131 = vpow2.f32 %v68_v27 }
  0xc2   :  { %v130_v28 = vpop.eup %129 }
  0xc3   :  { %v70_v29 = vrot.slane %v130_v28, 4  ;;  %v82_v30 = vmul.f32 %v130_v28, %v30_v0 }
  0xc5   :  { %v71_v31 = vadd.f32 %v130_v28, %v70_v29  ;;  %v84_v32 = vsel %vm42_vm0, %v82_v30, 0.0 }
  0xc6   :  { %v132_v33 = vpop.eup %131  ;;  %v85_v37 = vrot.slane %v84_v32, 4 }
  0xc7   :  { %v72_v34 = vrot.slane %v71_v31, 2  ;;  %v76_v35 = vrot.slane %v132_v33, 4  ;;  %v83_v36 = vmul.f32 %v132_v33, %v31_v2 }
  0xc8   :  { %v86_v44 = vadd.f32 %v85_v37, %v84_v32 }
  0xc9   :  { %v73_v38 = vadd.f32 %v72_v34, %v71_v31  ;;  %v77_v39 = vadd.f32 %v132_v33, %v76_v35  ;;  %v91_v40 = vsel %vm42_vm0, %v83_v36, 0.0 }
  0xca   :  { %v92_v41 = vrot.slane %v91_v40, 4  ;;  %v87_v49 = vrot.slane %v86_v44, 2 }
  0xcb   :  { %v74_v42 = vrot.slane %v73_v38, 1  ;;  %v78_v43 = vrot.slane %v77_v39, 2 }
  0xcc   :  { %v93_v45 = vadd.f32 %v92_v41, %v91_v40  ;;  %v88_v52 = vadd.f32 %v87_v49, %v86_v44 }
  0xcd   :  { %v75_v46 = vadd.f32 %v74_v42, %v73_v38  ;;  %v79_v47 = vadd.f32 %v78_v43, %v77_v39 }
  0xce   :  { %v94_v50 = vrot.slane %v93_v45, 2  ;;  %v89_v54 = vrot.slane %v88_v52, 1 }
  0xcf   :  { %v80_v48 = vrot.slane %v79_v47, 1  ;;  %133 = vrcp.f32 %v75_v46 }
  0xd0   :  { %v95_v53 = vadd.f32 %v94_v50, %v93_v45  ;;  %v90_v57 = vadd.f32 %v89_v54, %v88_v52 }
  0xd1   :  { %v81_v51 = vadd.f32 %v80_v48, %v79_v47 }
  0xd2   :  { %v96_v55 = vrot.slane %v95_v53, 1 }
  0xd3   :  { %135 = vrcp.f32 %v81_v51 }
  0xd4   :  { %v97_v58 = vadd.f32 %v96_v55, %v95_v53 }
  0xd9   :  { %v134_v56 = vpop.eup %133 }
  0xda   :  { %v100_v60 = vmul.f32 %v134_v56, %v90_v57 }
  0xdd   :  { %v136_v59 = vpop.eup %135 }
  0xde   :  { %v101_v61 = vmul.f32 %v136_v59, %v97_v58 }
  0xe0   :  { %v105_v62 = vsel %vm104_vm1, %v101_v61, %v100_v60 }
  0xe1   :  { %108 = vst.msk [vmem:[#allocation6] sm:$0x3] %vm107_vm2, %v105_v62 }
  0xe2   :  { %170 = shalt.err (!%p167_p12)
}
  0xe3   :  { %s171_s5 = scalar_lea.hbm %s246_s3, 32 }
  0xe4   :  { %p172_p13 = scmp.ne.s32.totalorder %s246_s3, %s171_s5  ;;  %p175_p0 = scmp.lt.u32.totalorder %s171_s5, %s246_s3 }
  0xe6   :  { %p177_p1 = pnand %p175_p0, %p172_p13 }
  0xe8   :  { %180 = shalt.err (!%p177_p1)
}
  0xe9   :  { %118 = dma.vmem_to_hbm [thread:$0]  %s116_s1, 32, %s246_s3, [#allocation5]  }
  0xea   :  { %183 = dma.done.wait [#allocation5], 32  }
  0xeb   :  { %184 = vsyncadd [#allocation5], 4294967264 }
  0xec   :  { %122 = vsyncpa [#allocation4], 1 }
  0xed   :  { %123 = vsyncpa [#allocation5], 1 }

</bundles_post_ra>
